<compile_context>
chip_gen: v7x
topology: tpu7x:2x2x1
jax: 0.10.0
libtpu: 0.0.40
codegen_flags: <defaults>
</compile_context>

<pallas_src>
import functools

import jax
import jax.numpy as jnp
from jax.experimental import pallas as pl
from jax.experimental.pallas import tpu as pltpu

BN_EPS = 1e-5
_SINGLE_BUFFER_W_BYTES = 4 << 20   # single-buffer the weight once it is >= 4 MiB
_MAX_X_BLOCK_BYTES = 8 << 20       # per-buffer cap for the x tile (DMA sweet spot)


def _vmem_config(C):
    """Generation-aware VMEM limit + per-buffer x budget (bytes)."""
    try:
        cap = int(pltpu.get_tpu_info().vmem_capacity_bytes)
    except Exception:
        cap = 64 * 1024 * 1024  # conservative (v7x-sized) fallback
    # 128 MiB parts (v5e/v6e) -> ~96 MiB limit; 64 MiB parts (v7x) -> 48 MiB.
    vmem_limit = min((cap * 3) // 4, 100 * 1024 * 1024)
    w_buffers = 1 if C * C * 4 >= _SINGLE_BUFFER_W_BYTES else 2
    w_bytes = C * C * 4 * w_buffers
    x_budget = (vmem_limit - w_bytes - (4 << 20)) // 2   # double-buffered x
    x_budget = max(min(x_budget, _MAX_X_BLOCK_BYTES), 1 << 20)
    return int(vmem_limit), int(x_budget), w_buffers


def _choose_blocking(N, C, HW, x_budget_bytes):
    """Pick (bn, tile_p): samples per grid step and pixels per tile."""
    target_elems = max(x_budget_bytes // 4, C * min(HW, 128))
    max_p = max(target_elems // C, 1)
    if HW <= max_p:
        # Whole image per step; block several samples per step while they fit.
        tile_p = HW
        bn = 1
        start = min(N, max(max_p // max(HW, 1), 1))
        for cand in range(start, 0, -1):
            if N % cand == 0:          # bn must divide N (no OOB sample rows)
                bn = cand
                break
        return bn, tile_p
    # One sample per step; tile the pixel axis in multiples of 128.
    tile_p = max((max_p // 128) * 128, 128)
    # Prefer a divisor of HW (no masked tail tile) if one is not much smaller.
    for t in range(tile_p, max(tile_p // 2, 127), -128):
        if HW % t == 0:
            return 1, t
    return 1, tile_p


def _conv_stats_kernel(x_ref, w_ref, b_ref, ysum_ref, y2sum_ref, *,
                       hw, tile_p, bn, use_bf16):
    # x_ref    : (bn, C, TILE_P)  NCHW activations (pixels on lanes)
    # w_ref    : (C, C)           1x1 conv weight (out, in)
    # b_ref    : (C, 1)           conv bias
    # ysum_ref : (1, C, bn)       per-sample sum_p y   (output accumulator)
    # y2sum_ref: (1, C, bn)       per-sample sum_p y^2 (output accumulator)
    p = pl.program_id(1)
    num_p = pl.num_programs(1)
    C = x_ref.shape[1]

    @pl.when(p == 0)
    def _init():
        ysum_ref[...] = jnp.zeros_like(ysum_ref)
        y2sum_ref[...] = jnp.zeros_like(y2sum_ref)

    w = w_ref[...]
    if use_bf16:
        w = w.astype(jnp.bfloat16)
    b = b_ref[...]  # (C, 1) f32

    def accumulate(mask):
        ys, y2s = [], []
        for s in range(bn):                       # static unrolled sample loop
            xs = x_ref[s]                          # (C, TILE_P)
            if use_bf16:
                xs = xs.astype(jnp.bfloat16)
            # 1x1 conv == per-pixel channel matmul on the MXU; f32 accumulation.
            y = jnp.dot(w, xs, preferred_element_type=jnp.float32) + b
            if mask is not None:
                y = jnp.where(mask, y, 0.0)
            ys.append(jnp.sum(y, axis=1, keepdims=True))       # (C, 1)
            y2s.append(jnp.sum(y * y, axis=1, keepdims=True))  # (C, 1)
        ysum_ref[0] += ys[0] if bn == 1 else jnp.concatenate(ys, axis=1)
        y2sum_ref[0] += y2s[0] if bn == 1 else jnp.concatenate(y2s, axis=1)

    if hw % tile_p == 0:
        accumulate(None)
    else:
        # Only the tail tile pays the lane mask; full tiles run unmasked.
        @pl.when(p < num_p - 1)
        def _full_tiles():
            accumulate(None)

        @pl.when(p == num_p - 1)
        def _tail_tile():
            lane = jax.lax.broadcasted_iota(jnp.int32, (C, tile_p), 1)
            accumulate(p * tile_p + lane < hw)


def transform_forward(x_nchw, conv_w, conv_b, bn_gamma, bn_beta, *,
                      tile_p=None, bn=None, use_bf16=None):
    """Pallas implementation of Transform.forward.

    x_nchw : (N, C, H, W) float32
    conv_w : (C, C, 1, 1) float32
    conv_b, bn_gamma, bn_beta : (C,) float32
    returns: (N, C, 1, 1) float32
    """
    N, C, H, W = x_nchw.shape
    HW = H * W
    x = x_nchw.reshape(N, C, HW)      # contiguous reshape, no transpose/copy
    w = conv_w.reshape(C, C)          # (out, in)

    if use_bf16 is None:
        use_bf16 = C >= 1024          # memory-bound below this; keep f32 dot

    vmem_limit, x_budget, w_buffers = _vmem_config(C)
    auto_bn, auto_tile_p = _choose_blocking(N, C, HW, x_budget)
    if tile_p is None:
        tile_p = auto_tile_p
    if bn is None:
        bn = auto_bn if tile_p == auto_tile_p else 1
    if N % bn != 0:
        bn = 1
    n_blocks = N // bn
    grid = (n_blocks, pl.cdiv(HW, tile_p))

    kernel = functools.partial(_conv_stats_kernel, hw=HW, tile_p=tile_p,
                               bn=bn, use_bf16=use_bf16)

    w_spec_kwargs = {}
    if w_buffers == 1:
        # Grid-invariant operand: single-buffer to halve its VMEM footprint.
        w_spec_kwargs["pipeline_mode"] = pl.Buffered(1)

    flops = 2 * N * HW * C * C + 6 * N * HW * C
    bytes_accessed = 4 * (N * HW * C + C * C + C + 2 * N * C)

    ysum_blk, y2sum_blk = pl.pallas_call(
        kernel,
        out_shape=(jax.ShapeDtypeStruct((n_blocks, C, bn), jnp.float32),
                   jax.ShapeDtypeStruct((n_blocks, C, bn), jnp.float32)),
        grid_spec=pltpu.PrefetchScalarGridSpec(
            num_scalar_prefetch=0,
            grid=grid,
            in_specs=[
                pl.BlockSpec((bn, C, tile_p), lambda n, p: (n, 0, p)),
                pl.BlockSpec((C, C), lambda n, p: (0, 0), **w_spec_kwargs),
                pl.BlockSpec((C, 1), lambda n, p: (0, 0)),
            ],
            out_specs=[
                pl.BlockSpec((1, C, bn), lambda n, p: (n, 0, 0)),
                pl.BlockSpec((1, C, bn), lambda n, p: (n, 0, 0)),
            ],
        ),
        compiler_params=pltpu.CompilerParams(
            # Sample-block axis is parallel (megacore-safe: disjoint output
            # blocks per n); the pixel axis is the in-place reduction.
            dimension_semantics=("parallel", "arbitrary"),
            vmem_limit_bytes=vmem_limit,
        ),
        cost_estimate=pl.CostEstimate(flops=flops, transcendentals=0,
                                      bytes_accessed=bytes_accessed),
    )(x, w, conv_b.reshape(C, 1))

    # Tiny O(N*C) epilogue in plain JAX: global BN stats + affine + pool.
    ysum = jnp.moveaxis(ysum_blk, 0, 1).reshape(C, n_blocks * bn)    # (C, N)
    y2sum = jnp.moveaxis(y2sum_blk, 0, 1).reshape(C, n_blocks * bn)  # (C, N)
    count = float(N * HW)
    mu = jnp.sum(ysum, axis=1, keepdims=True) / count                # (C, 1)
    var = jnp.sum(y2sum, axis=1, keepdims=True) / count - mu * mu    # biased
    var = jnp.maximum(var, 0.0)            # guard E[y^2]-E[y]^2 cancellation
    rstd = jax.lax.rsqrt(var + BN_EPS)
    pooled = ysum / float(HW)                                         # (C, N)
    out_cn = bn_gamma.reshape(C, 1) * rstd * (pooled - mu) + bn_beta.reshape(C, 1)
    return jnp.transpose(out_cn).reshape(N, C, 1, 1).astype(x_nchw.dtype)


def transform_reference(x_nchw, conv_w, conv_b, bn_gamma, bn_beta):
    """Pure-JAX reference matching PyTorch semantics (training-mode BN)."""
    N, C, H, W = x_nchw.shape
    w = conv_w.reshape(C, C)  # (out, in)
    y = jnp.einsum("nchw,oc->nohw", x_nchw, w) + conv_b[None, :, None, None]
    mu = jnp.mean(y, axis=(0, 2, 3))
    var = jnp.mean((y - mu[None, :, None, None]) ** 2, axis=(0, 2, 3))
    yn = (
        bn_gamma[None, :, None, None]
        * (y - mu[None, :, None, None])
        * jax.lax.rsqrt(var[None, :, None, None] + BN_EPS)
        + bn_beta[None, :, None, None]
    )
    return jnp.mean(yn, axis=(2, 3), keepdims=True)


if __name__ == "__main__":
    key = jax.random.PRNGKey(0)
    kx, kw, kb, kg, kbt, kx2 = jax.random.split(key, 6)

    N, C, H, W = 2, 128, 16, 16
    x = jax.random.normal(kx, (N, C, H, W), dtype=jnp.float32)
    conv_w = 0.1 * jax.random.normal(kw, (C, C, 1, 1), dtype=jnp.float32)
    conv_b = 0.01 * jax.random.normal(kb, (C,), dtype=jnp.float32)
    bn_gamma = 1.0 + 0.05 * jax.random.normal(kg, (C,), dtype=jnp.float32)
    bn_beta = 0.05 * jax.random.normal(kbt, (C,), dtype=jnp.float32)

    ref = transform_reference(x, conv_w, conv_b, bn_gamma, bn_beta)

    # Auto-tiled path (whole image per step, samples blocked per step).
    out = jax.block_until_ready(
        transform_forward(x, conv_w, conv_b, bn_gamma, bn_beta))
    assert out.shape == (N, C, 1, 1), out.shape
    assert jnp.allclose(out, ref, atol=5e-4, rtol=5e-4), (
        float(jnp.max(jnp.abs(out - ref))))

    # Multi-tile / multi-sample-block path: exercises accumulation across
    # pixel tiles and the "parallel" per-sample-block grid axis.
    out2 = jax.block_until_ready(
        transform_forward(x, conv_w, conv_b, bn_gamma, bn_beta, tile_p=128, bn=1))
    assert jnp.allclose(out2, ref, atol=5e-4, rtol=5e-4), (
        float(jnp.max(jnp.abs(out2 - ref))))

    # Ragged spatial extent: exercises the masked tail-tile path only.
    H3 = W3 = 12
    x3 = jax.random.normal(kx2, (N, C, H3, W3), dtype=jnp.float32)
    ref3 = transform_reference(x3, conv_w, conv_b, bn_gamma, bn_beta)
    out3 = jax.block_until_ready(
        transform_forward(x3, conv_w, conv_b, bn_gamma, bn_beta, tile_p=128, bn=1))
    assert jnp.allclose(out3, ref3, atol=5e-4, rtol=5e-4), (
        float(jnp.max(jnp.abs(out3 - ref3))))

    print("KERNEL_OK")
</pallas_src>

<mosaic_0001>
module attributes {stable_mosaic.version = 11 : i64} {
  func.func @_conv_stats_kernel(%arg0: i32, %arg1: i32, %arg2: memref<2x128x256xf32, #tpu.memory_space<vmem>>, %arg3: memref<128x128xf32, #tpu.memory_space<vmem>>, %arg4: memref<128x1xf32, #tpu.memory_space<vmem>>, %arg5: memref<1x128x2xf32, #tpu.memory_space<vmem>>, %arg6: memref<1x128x2xf32, #tpu.memory_space<vmem>>) attributes {dimension_semantics = [#tpu.dimension_semantics<parallel>, #tpu.dimension_semantics<arbitrary>], iteration_bounds = array<i64: 1, 1>, scalar_prefetch = 0 : i64, scratch_operands = 0 : i64, tpu.core_type = #tpu.core_type<tc>, window_params = [{transform_indices = @transform_0, window_bounds = array<i64: 2, 128, 256>}, {pipeline_mode = #tpu.pipeline_mode<synchronous>, transform_indices = @transform_1, window_bounds = array<i64: 128, 128>}, {pipeline_mode = #tpu.pipeline_mode<synchronous>, transform_indices = @transform_2, window_bounds = array<i64: 128, 1>}, {transform_indices = @transform_3, window_bounds = array<i64: 1, 128, 2>}, {transform_indices = @transform_4, window_bounds = array<i64: 1, 128, 2>}]} {
    %c0_i32 = arith.constant 0 : i32
    %0 = arith.cmpi eq, %arg1, %c0_i32 : i32
    %1 = arith.extui %0 : i1 to i32
    %c0_i32_0 = arith.constant 0 : i32
    %2 = arith.cmpi ne, %1, %c0_i32_0 : i32
    scf.if %2 {
      %cst_26 = arith.constant 0.000000e+00 : f32
      %39 = vector.broadcast %cst_26 : f32 to vector<1x128x2xf32>
      %c0_27 = arith.constant 0 : index
      %c0_28 = arith.constant 0 : index
      %c0_29 = arith.constant 0 : index
      %40 = vector.load %arg5[%c0_27, %c0_28, %c0_29] : memref<1x128x2xf32, #tpu.memory_space<vmem>>, vector<1x128x2xf32>
      tpu.vector_store %arg5[%c0_27, %c0_28, %c0_29], %39 {strides = array<i32>} : memref<1x128x2xf32, #tpu.memory_space<vmem>>, vector<1x128x2xf32>,
      %cst_30 = arith.constant 0.000000e+00 : f32
      %41 = vector.broadcast %cst_30 : f32 to vector<1x128x2xf32>
      %c0_31 = arith.constant 0 : index
      %c0_32 = arith.constant 0 : index
      %c0_33 = arith.constant 0 : index
      %42 = vector.load %arg6[%c0_31, %c0_32, %c0_33] : memref<1x128x2xf32, #tpu.memory_space<vmem>>, vector<1x128x2xf32>
      tpu.vector_store %arg6[%c0_31, %c0_32, %c0_33], %41 {strides = array<i32>} : memref<1x128x2xf32, #tpu.memory_space<vmem>>, vector<1x128x2xf32>,
    } else {
    }
    %c0 = arith.constant 0 : index
    %c0_1 = arith.constant 0 : index
    %3 = vector.load %arg3[%c0, %c0_1] : memref<128x128xf32, #tpu.memory_space<vmem>>, vector<128x128xf32>
    %c0_2 = arith.constant 0 : index
    %c0_3 = arith.constant 0 : index
    %4 = vector.load %arg4[%c0_2, %c0_3] : memref<128x1xf32, #tpu.memory_space<vmem>>, vector<128x1xf32>
    %c0_4 = arith.constant 0 : index
    %c0_5 = arith.constant 0 : index
    %c0_6 = arith.constant 0 : index
    %5 = vector.load %arg2[%c0_4, %c0_5, %c0_6] : memref<2x128x256xf32, #tpu.memory_space<vmem>>, vector<1x128x256xf32>
    %6 = vector.shape_cast %5 : vector<1x128x256xf32> to vector<128x256xf32>
    %cst = arith.constant dense<0.000000e+00> : vector<128x256xf32>
    %7 = tpu.matmul %3, %6, %cst {dimension_numbers = #tpu.dot_dimension_numbers<[1], [0], [0], [1], [0, 0, 1, 1], [], []>} : vector<128x128xf32>, vector<128x256xf32>, vector<128x256xf32> -> vector<128x256xf32>
    %8 = vector.broadcast %4 : vector<128x1xf32> to vector<128x256xf32>
    %9 = arith.addf %7, %8 : vector<128x256xf32>
    %cst_7 = arith.constant dense<0.000000e+00> : vector<128xf32>
    %10 = vector.multi_reduction <add>, %9, %cst_7 [1] : vector<128x256xf32> to vector<128xf32>
    %11 = vector.shape_cast %10 : vector<128xf32> to vector<128x1xf32>
    %12 = arith.mulf %9, %9 : vector<128x256xf32>
    %cst_8 = arith.constant dense<0.000000e+00> : vector<128xf32>
    %13 = vector.multi_reduction <add>, %12, %cst_8 [1] : vector<128x256xf32> to vector<128xf32>
    %14 = vector.shape_cast %13 : vector<128xf32> to vector<128x1xf32>
    %c1 = arith.constant 1 : index
    %c0_9 = arith.constant 0 : index
    %c0_10 = arith.constant 0 : index
    %15 = vector.load %arg2[%c1, %c0_9, %c0_10] : memref<2x128x256xf32, #tpu.memory_space<vmem>>, vector<1x128x256xf32>
    %16 = vector.shape_cast %15 : vector<1x128x256xf32> to vector<128x256xf32>
    %cst_11 = arith.constant dense<0.000000e+00> : vector<128x256xf32>
    %17 = tpu.matmul %3, %16, %cst_11 {dimension_numbers = #tpu.dot_dimension_numbers<[1], [0], [0], [1], [0, 0, 1, 1], [], []>} : vector<128x128xf32>, vector<128x256xf32>, vector<128x256xf32> -> vector<128x256xf32>
    %18 = vector.broadcast %4 : vector<128x1xf32> to vector<128x256xf32>
    %19 = arith.addf %17, %18 : vector<128x256xf32>
    %cst_12 = arith.constant dense<0.000000e+00> : vector<128xf32>
    %20 = vector.multi_reduction <add>, %19, %cst_12 [1] : vector<128x256xf32> to vector<128xf32>
    %21 = vector.shape_cast %20 : vector<128xf32> to vector<128x1xf32>
    %22 = arith.mulf %19, %19 : vector<128x256xf32>
    %cst_13 = arith.constant dense<0.000000e+00> : vector<128xf32>
    %23 = vector.multi_reduction <add>, %22, %cst_13 [1] : vector<128x256xf32> to vector<128xf32>
    %24 = vector.shape_cast %23 : vector<128xf32> to vector<128x1xf32>
    %c0_14 = arith.constant 0 : index
    %c0_15 = arith.constant 0 : index
    %c0_16 = arith.constant 0 : index
    %25 = vector.load %arg5[%c0_14, %c0_15, %c0_16] : memref<1x128x2xf32, #tpu.memory_space<vmem>>, vector<1x128x2xf32>
    %26 = vector.shape_cast %25 : vector<1x128x2xf32> to vector<128x2xf32>
    %27 = tpu.concatenate %11, %21 in 1 : vector<128x1xf32>, vector<128x1xf32> -> vector<128x2xf32>
    %28 = arith.addf %26, %27 : vector<128x2xf32>
    %c0_17 = arith.constant 0 : index
    %c0_18 = arith.constant 0 : index
    %c0_19 = arith.constant 0 : index
    %29 = vector.load %arg5[%c0_17, %c0_18, %c0_19] : memref<1x128x2xf32, #tpu.memory_space<vmem>>, vector<1x128x2xf32>
    %30 = vector.shape_cast %29 : vector<1x128x2xf32> to vector<128x2xf32>
    %31 = vector.shape_cast %28 : vector<128x2xf32> to vector<1x128x2xf32>
    tpu.vector_store %arg5[%c0_17, %c0_18, %c0_19], %31 {strides = array<i32>} : memref<1x128x2xf32, #tpu.memory_space<vmem>>, vector<1x128x2xf32>,
    %c0_20 = arith.constant 0 : index
    %c0_21 = arith.constant 0 : index
    %c0_22 = arith.constant 0 : index
    %32 = vector.load %arg6[%c0_20, %c0_21, %c0_22] : memref<1x128x2xf32, #tpu.memory_space<vmem>>, vector<1x128x2xf32>
    %33 = vector.shape_cast %32 : vector<1x128x2xf32> to vector<128x2xf32>
    %34 = tpu.concatenate %14, %24 in 1 : vector<128x1xf32>, vector<128x1xf32> -> vector<128x2xf32>
    %35 = arith.addf %33, %34 : vector<128x2xf32>
    %c0_23 = arith.constant 0 : index
    %c0_24 = arith.constant 0 : index
    %c0_25 = arith.constant 0 : index
    %36 = vector.load %arg6[%c0_23, %c0_24, %c0_25] : memref<1x128x2xf32, #tpu.memory_space<vmem>>, vector<1x128x2xf32>
    %37 = vector.shape_cast %36 : vector<1x128x2xf32> to vector<128x2xf32>
    %38 = vector.shape_cast %35 : vector<128x2xf32> to vector<1x128x2xf32>
    tpu.vector_store %arg6[%c0_23, %c0_24, %c0_25], %38 {strides = array<i32>} : memref<1x128x2xf32, #tpu.memory_space<vmem>>, vector<1x128x2xf32>,
    return
  }
  func.func @transform_0(%arg0: i32, %arg1: i32) -> (i32, i32, i32) {
    %c0_i32 = arith.constant 0 : i32
    %c0_i32_0 = arith.constant 0 : i32
    return %arg0, %c0_i32, %arg1 : i32, i32, i32
  }
  func.func @transform_1(%arg0: i32, %arg1: i32) -> (i32, i32) {
    %c0_i32 = arith.constant 0 : i32
    %c0_i32_0 = arith.constant 0 : i32
    %c0_i32_1 = arith.constant 0 : i32
    return %c0_i32, %c0_i32_0 : i32, i32
  }
  func.func @transform_2(%arg0: i32, %arg1: i32) -> (i32, i32) {
    %c0_i32 = arith.constant 0 : i32
    %c0_i32_0 = arith.constant 0 : i32
    %c0_i32_1 = arith.constant 0 : i32
    return %c0_i32, %c0_i32_0 : i32, i32
  }
  func.func @transform_3(%arg0: i32, %arg1: i32) -> (i32, i32, i32) {
    %c0_i32 = arith.constant 0 : i32
    %c0_i32_0 = arith.constant 0 : i32
    %c0_i32_1 = arith.constant 0 : i32
    return %arg0, %c0_i32, %c0_i32_0 : i32, i32, i32
  }
  func.func @transform_4(%arg0: i32, %arg1: i32) -> (i32, i32, i32) {
    %c0_i32 = arith.constant 0 : i32
    %c0_i32_0 = arith.constant 0 : i32
    %c0_i32_1 = arith.constant 0 : i32
    return %arg0, %c0_i32, %c0_i32_0 : i32, i32, i32
  }
}

</mosaic_0001>

<bundles_post_ra>
// kernel: tpu_custom_call.1
= control target key start
LH: loop header
LB: loop body
LE: loop exit
PB: predicated region body
PF: predicated region fallthrough
CT: control target
= control target key end

     0   :  { %10 = vsyncpa [#allocation3], 0  ;;  %s1056_s15 = smov [#allocation2]   ;;  %s1780_s0 = inlined_call_operand.hbm [shape: f32[2,128,256], index: 0, kind: input, shape index: {}]   ;;  %s1781_s1 = inlined_call_operand.vmem [shape: f32[128,128], index: 1, kind: input, shape index: {}]   ;;  %s1782_s2 = inlined_call_operand.vmem [shape: f32[128,1], index: 2, kind: input, shape index: {}]   ;;  %s1783_s3 = inlined_call_operand.vmem [shape: f32[1,128,2], index: 3, kind: output, shape index: {0}]   ;;  %s1784_s4 = inlined_call_operand.vmem [shape: f32[1,128,2], index: 4, kind: output, shape index: {1}]  }
   0x1   :  { %s16_s16 = sshll.u32 %s1056_s15, 4  ;;  %s1032_s19 = scalar_lea.hbm %s1780_s0, 8192  ;;  %s17_s16 = int_to_ptr.vmem [resolvable:$true] %s16_s16 }
   0x2   :  { %p1033_p0 = scmp.ne.s32.totalorder %s1780_s0, %s1032_s19  ;;  %p1036_p1 = scmp.lt.u32.totalorder %s1032_s19, %s1780_s0 }
   0x4   :  { %p1038_p2 = pnand %p1036_p1, %p1033_p0 }
   0x6   :  { %1041 = shalt.err (!%p1038_p2)
}
   0x7   :  { %s1042_s24 = scalar_lea.vmem %s17_s16, 8192  ;;  %p1047_p4 = scmp.lt.s32.totalorder %s17_s16, %s17_s16 }
   0x8   :  { %p1043_p3 = scmp.ne.s32.totalorder %s17_s16, %s1042_s24  ;;  %p1048_p5 = scmp.lt.s32.totalorder %s1042_s24, %s1042_s24 }
   0xa   :  { %p1049_p6 = por %p1048_p5, %p1047_p4 }
   0xc   :  { %p1050_p7 = pnand %p1049_p6, %p1043_p3 }
   0xe   :  { %1053 = shalt.err (!%p1050_p7)
}
   0xf   :  { %s1057_s25 = smov 256   ;;  %s1058_s26 = smov 16  }
  0x10   :  { %22 = dma.hbm_to_vmem [thread:$0]  %s1780_s0, 8192, %s17_s16, [#allocation3], %s1057_s25, %s1057_s25, %s1058_s26  }
  0x11   :  { %1054 = dma.done.wait [#allocation3], 8192  }
  0x12   :  { %1055 = vsyncadd [#allocation3], 4294959104  ;;  %v1059_v0 = vmov 0.0   ;;  %v1060_v1 = vmov 0   ;;  %v100_v2 = vld [vmem:[#allocation2 + $0x8] sm:$0xff]  ;;  %v102_v3 = vld [vmem:[#allocation2 + $0x18] sm:$0xff] }
  0x13   :  { %275 = vmatprep.mubr.f32.mxu0 %v1059_v0  ;;  %597 = vmatprep.mubr.f32.mxu1 %v1059_v0  ;;  %v502_v4 = vld [vmem:[#allocation2 + $0x108] sm:$0xff]  ;;  %v961_v5 = vpack.c.bf16 %v102_v3, %v100_v2  ;;  %v504_v6 = vld [vmem:[#allocation2 + $0x118] sm:$0xff]  ;;  %v99_v7 = vld [vmem:[#allocation2] sm:$0xff]  ;;  %vm34_vm0 = vcmask 15360   ;;  %vm838_vm1 = vcmask 7168  }
  0x14   :  { %1030 = vset.pattern.permute.xlu0 %v1060_v1  ;;  %1031 = vset.pattern.permute.xlu1 %v1060_v1  ;;  %v101_v8 = vld [vmem:[#allocation2 + $0x10] sm:$0xff]  ;;  %v993_v9 = vpack.c.bf16 %v504_v6, %v502_v4  ;;  %v501_v11 = vld [vmem:[#allocation2 + $0x100] sm:$0xff]  ;;  %v104_v13 = vld [vmem:[#allocation2 + $0x28] sm:$0xff]  ;;  %35 = vst.msk [vmem:[%s1783_s3] sm:$0xff] %vm34_vm0, %v1059_v0 }
  0x15   :  { %v963_v10 = vpack.c.bf16 %v101_v8, %v99_v7  ;;  %v503_v12 = vld [vmem:[#allocation2 + $0x110] sm:$0xff]  ;;  %962 = vmatprep.subr.bf16.mxu0 %v961_v5  ;;  %v106_v15 = vld [vmem:[#allocation2 + $0x38] sm:$0xff]  ;;  %v506_v16 = vld [vmem:[#allocation2 + $0x128] sm:$0xff]  ;;  %36 = vst.msk [vmem:[%s1783_s3 + $0x8] sm:$0xff] %vm34_vm0, %v1059_v0 }
  0x16   :  { %v995_v14 = vpack.c.bf16 %v503_v12, %v501_v11  ;;  %v508_v17 = vld [vmem:[#allocation2 + $0x138] sm:$0xff]  ;;  %994 = vmatprep.subr.bf16.mxu1 %v993_v9  ;;  %v965_v18 = vpack.c.bf16 %v106_v15, %v104_v13  ;;  %v103_v20 = vld [vmem:[#allocation2 + $0x20] sm:$0xff]  ;;  %v105_v21 = vld [vmem:[#allocation2 + $0x30] sm:$0xff]  ;;  %37 = vst.msk [vmem:[%s1783_s3 + $0x10] sm:$0xff] %vm34_vm0, %v1059_v0 }
  0x17   :  { %964 = vmatpush1.bf16.msra.mxu0 %v963_v10  ;;  %v997_v19 = vpack.c.bf16 %v508_v17, %v506_v16  ;;  %v505_v22 = vld [vmem:[#allocation2 + $0x120] sm:$0xff]  ;;  %v967_v23 = vpack.c.bf16 %v105_v21, %v103_v20  ;;  %v507_v24 = vld [vmem:[#allocation2 + $0x130] sm:$0xff]  ;;  %v108_v25 = vld [vmem:[#allocation2 + $0x48] sm:$0xff]  ;;  %38 = vst.msk [vmem:[%s1783_s3 + $0x18] sm:$0xff] %vm34_vm0, %v1059_v0 }
  0x18   :  { %996 = vmatpush1.bf16.msra.mxu1 %v995_v14  ;;  %v110_v26 = vld [vmem:[#allocation2 + $0x58] sm:$0xff]  ;;  %966 = vmatprep.subr.bf16.mxu0 %v965_v18  ;;  %v999_v27 = vpack.c.bf16 %v507_v24, %v505_v22  ;;  %v510_v29 = vld [vmem:[#allocation2 + $0x148] sm:$0xff]  ;;  %v107_v31 = vld [vmem:[#allocation2 + $0x40] sm:$0xff]  ;;  %39 = vst.msk [vmem:[%s1783_s3 + $0x20] sm:$0xff] %vm34_vm0, %v1059_v0 }
  0x19   :  { %998 = vmatprep.subr.bf16.mxu1 %v997_v19  ;;  %v969_v28 = vpack.c.bf16 %v110_v26, %v108_v25  ;;  %v512_v30 = vld [vmem:[#allocation2 + $0x158] sm:$0xff]  ;;  %v109_v33 = vld [vmem:[#allocation2 + $0x50] sm:$0xff]  ;;  %v509_v34 = vld [vmem:[#allocation2 + $0x140] sm:$0xff]  ;;  %40 = vst.msk [vmem:[%s1783_s3 + $0x28] sm:$0xff] %vm34_vm0, %v1059_v0 }
  0x1a   :  { %v1001_v32 = vpack.c.bf16 %v512_v30, %v510_v29  ;;  %v511_v35 = vld [vmem:[#allocation2 + $0x150] sm:$0xff]  ;;  %v971_v36 = vpack.c.bf16 %v109_v33, %v107_v31  ;;  %v112_v37 = vld [vmem:[#allocation2 + $0x68] sm:$0xff]  ;;  %v114_v38 = vld [vmem:[#allocation2 + $0x78] sm:$0xff]  ;;  %41 = vst.msk [vmem:[%s1783_s3 + $0x30] sm:$0xff] %vm34_vm0, %v1059_v0 }
  0x1b   :  { %968 = vmatpush1.bf16.msra.mxu0 %v967_v23  ;;  %v514_v39 = vld [vmem:[#allocation2 + $0x168] sm:$0xff]  ;;  %v1003_v40 = vpack.c.bf16 %v511_v35, %v509_v34  ;;  %v973_v41 = vpack.c.bf16 %v114_v38, %v112_v37  ;;  %v516_v42 = vld [vmem:[#allocation2 + $0x178] sm:$0xff]  ;;  %v111_v43 = vld [vmem:[#allocation2 + $0x60] sm:$0xff]  ;;  %42 = vst.msk [vmem:[%s1783_s3 + $0x38] sm:$0xff] %vm34_vm0, %v1059_v0 }
  0x1c   :  { %1000 = vmatpush1.bf16.msra.mxu1 %v999_v27  ;;  %970 = vmatprep.subr.bf16.mxu0 %v969_v28  ;;  %v113_v44 = vld [vmem:[#allocation2 + $0x70] sm:$0xff]  ;;  %v1005_v45 = vpack.c.bf16 %v516_v42, %v514_v39  ;;  %v513_v46 = vld [vmem:[#allocation2 + $0x160] sm:$0xff]  ;;  %v116_v48 = vld [vmem:[#allocation2 + $0x88] sm:$0xff]  ;;  %43 = vst.msk [vmem:[%s1783_s3 + $0x40] sm:$0xff] %vm34_vm0, %v1059_v0 }
  0x1d   :  { %1002 = vmatprep.subr.bf16.mxu1 %v1001_v32  ;;  %v515_v47 = vld [vmem:[#allocation2 + $0x170] sm:$0xff]  ;;  %v118_v49 = vld [vmem:[#allocation2 + $0x98] sm:$0xff]  ;;  %v518_v50 = vld [vmem:[#allocation2 + $0x188] sm:$0xff]  ;;  %v975_v52 = vpack.c.bf16 %v113_v44, %v111_v43  ;;  %44 = vst.msk [vmem:[%s1783_s3 + $0x48] sm:$0xff] %vm34_vm0, %v1059_v0 }
  0x1e   :  { %v520_v51 = vld [vmem:[#allocation2 + $0x198] sm:$0xff]  ;;  %v1007_v53 = vpack.c.bf16 %v515_v47, %v513_v46  ;;  %v977_v54 = vpack.c.bf16 %v118_v49, %v116_v48  ;;  %v115_v55 = vld [vmem:[#allocation2 + $0x80] sm:$0xff]  ;;  %v117_v56 = vld [vmem:[#allocation2 + $0x90] sm:$0xff]  ;;  %45 = vst.msk [vmem:[%s1783_s3 + $0x50] sm:$0xff] %vm34_vm0, %v1059_v0 }
  0x1f   :  { %972 = vmatpush1.bf16.msra.mxu0 %v971_v36  ;;  %v517_v57 = vld [vmem:[#allocation2 + $0x180] sm:$0xff]  ;;  %v1009_v58 = vpack.c.bf16 %v520_v51, %v518_v50  ;;  %v519_v59 = vld [vmem:[#allocation2 + $0x190] sm:$0xff]  ;;  %v120_v60 = vld [vmem:[#allocation2 + $0xa8] sm:$0xff]  ;;  %v979_v1 = vpack.c.bf16 %v117_v56, %v115_v55  ;;  %46 = vst.msk [vmem:[%s1783_s3 + $0x58] sm:$0xff] %vm34_vm0, %v1059_v0 }
  0x20   :  { %1004 = vmatpush1.bf16.msra.mxu1 %v1003_v40  ;;  %974 = vmatprep.subr.bf16.mxu0 %v973_v41  ;;  %v122_v61 = vld [vmem:[#allocation2 + $0xb8] sm:$0xff]  ;;  %v522_v62 = vld [vmem:[#allocation2 + $0x1a8] sm:$0xff]  ;;  %v1011_v2 = vpack.c.bf16 %v519_v59, %v517_v57  ;;  %v119_v4 = vld [vmem:[#allocation2 + $0xa0] sm:$0xff]  ;;  %47 = vst.msk [vmem:[%s1783_s3 + $0x60] sm:$0xff] %vm34_vm0, %v1059_v0 }
  0x21   :  { %1006 = vmatprep.subr.bf16.mxu1 %v1005_v45  ;;  %v524_v63 = vld [vmem:[#allocation2 + $0x1b8] sm:$0xff]  ;;  %v981_v3 = vpack.c.bf16 %v122_v61, %v120_v60  ;;  %v121_v5 = vld [vmem:[#allocation2 + $0xb0] sm:$0xff]  ;;  %v521_v6 = vld [vmem:[#allocation2 + $0x1a0] sm:$0xff]  ;;  %48 = vst.msk [vmem:[%s1783_s3 + $0x68] sm:$0xff] %vm34_vm0, %v1059_v0 }
  0x22   :  { %v1013_v7 = vpack.c.bf16 %v524_v63, %v522_v62  ;;  %v523_v8 = vld [vmem:[#allocation2 + $0x1b0] sm:$0xff]  ;;  %v124_v9 = vld [vmem:[#allocation2 + $0xc8] sm:$0xff]  ;;  %v126_v10 = vld [vmem:[#allocation2 + $0xd8] sm:$0xff]  ;;  %v983_v13 = vpack.c.bf16 %v121_v5, %v119_v4  ;;  %49 = vst.msk [vmem:[%s1783_s3 + $0x70] sm:$0xff] %vm34_vm0, %v1059_v0 }
  0x23   :  { %976 = vmatpush1.bf16.msra.mxu0 %v975_v52  ;;  %v526_v11 = vld [vmem:[#allocation2 + $0x1c8] sm:$0xff]  ;;  %v528_v12 = vld [vmem:[#allocation2 + $0x1d8] sm:$0xff]  ;;  %v1015_v14 = vpack.c.bf16 %v523_v8, %v521_v6  ;;  %v985_v15 = vpack.c.bf16 %v126_v10, %v124_v9  ;;  %v123_v16 = vld [vmem:[#allocation2 + $0xc0] sm:$0xff]  ;;  %50 = vst.msk [vmem:[%s1783_s3 + $0x78] sm:$0xff] %vm34_vm0, %v1059_v0 }
  0x24   :  { %1008 = vmatpush1.bf16.msra.mxu1 %v1007_v53  ;;  %978 = vmatprep.subr.bf16.mxu0 %v977_v54  ;;  %v125_v17 = vld [vmem:[#allocation2 + $0xd0] sm:$0xff]  ;;  %v525_v18 = vld [vmem:[#allocation2 + $0x1c0] sm:$0xff]  ;;  %v1017_v19 = vpack.c.bf16 %v528_v12, %v526_v11  ;;  %v128_v21 = vld [vmem:[#allocation2 + $0xe8] sm:$0xff]  ;;  %51 = vst.msk [vmem:[%s1784_s4] sm:$0xff] %vm34_vm0, %v1059_v0 }
  0x25   :  { %1010 = vmatprep.subr.bf16.mxu1 %v1009_v58  ;;  %v527_v20 = vld [vmem:[#allocation2 + $0x1d0] sm:$0xff]  ;;  %v130_v22 = vld [vmem:[#allocation2 + $0xf8] sm:$0xff]  ;;  %v530_v23 = vld [vmem:[#allocation2 + $0x1e8] sm:$0xff]  ;;  %v987_v25 = vpack.c.bf16 %v125_v17, %v123_v16  ;;  %52 = vst.msk [vmem:[%s1784_s4 + $0x8] sm:$0xff] %vm34_vm0, %v1059_v0 }
  0x26   :  { %v532_v24 = vld [vmem:[#allocation2 + $0x1f8] sm:$0xff]  ;;  %v1019_v26 = vpack.c.bf16 %v527_v20, %v525_v18  ;;  %v989_v27 = vpack.c.bf16 %v130_v22, %v128_v21  ;;  %v127_v28 = vld [vmem:[#allocation2 + $0xe0] sm:$0xff]  ;;  %v129_v29 = vld [vmem:[#allocation2 + $0xf0] sm:$0xff]  ;;  %53 = vst.msk [vmem:[%s1784_s4 + $0x10] sm:$0xff] %vm34_vm0, %v1059_v0 }
  0x27   :  { %980 = vmatpush1.bf16.msra.mxu0 %v979_v1  ;;  %v1021_v30 = vpack.c.bf16 %v532_v24, %v530_v23  ;;  %v529_v31 = vld [vmem:[#allocation2 + $0x1e0] sm:$0xff]  ;;  %v531_v32 = vld [vmem:[#allocation2 + $0x1f0] sm:$0xff]  ;;  %v991_v34 = vpack.c.bf16 %v129_v29, %v127_v28  ;;  %v84_v35 = vld [vmem:[%s1782_s2 + $0x8] sm:$0xff]  ;;  %54 = vst.msk [vmem:[%s1784_s4 + $0x18] sm:$0xff] %vm34_vm0, %v1059_v0 }
  0x28   :  { %1012 = vmatpush1.bf16.msra.mxu1 %v1011_v2  ;;  %982 = vmatprep.subr.bf16.mxu0 %v981_v3  ;;  %v83_v33 = vld [vmem:[%s1782_s2] sm:$0xff]  ;;  %v85_v36 = vld [vmem:[%s1782_s2 + $0x10] sm:$0xff]  ;;  %v1023_v37 = vpack.c.bf16 %v531_v32, %v529_v31  ;;  %v86_v38 = vld [vmem:[%s1782_s2 + $0x18] sm:$0xff]  ;;  %55 = vst.msk [vmem:[%s1784_s4 + $0x20] sm:$0xff] %vm34_vm0, %v1059_v0 }
  0x29   :  { %1014 = vmatprep.subr.bf16.mxu1 %v1013_v7  ;;  %133 = vperm.xlu0 %1030, %v83_v33   ;;  %v67_v39 = vld [vmem:[%s1781_s1] sm:$0xff]  ;;  %v88_v41 = vld [vmem:[%s1782_s2 + $0x28] sm:$0xff]  ;;  %v89_v43 = vld [vmem:[%s1782_s2 + $0x30] sm:$0xff]  ;;  %56 = vst.msk [vmem:[%s1784_s4 + $0x28] sm:$0xff] %vm34_vm0, %v1059_v0 }
  0x2a   :  { %143 = vperm.xlu1 %1031, %v85_v36   ;;  %v87_v40 = vld [vmem:[%s1782_s2 + $0x20] sm:$0xff]  ;;  %v68_v42 = vld [vmem:[%s1781_s1 + $0x8] sm:$0xff]  ;;  %v90_v44 = vld [vmem:[%s1782_s2 + $0x38] sm:$0xff]  ;;  %57 = vst.msk [vmem:[%s1784_s4 + $0x30] sm:$0xff] %vm34_vm0, %v1059_v0 }
  0x2b   :  { %984 = vmatpush1.bf16.msra.mxu0 %v983_v13  ;;  %v69_v45 = vld [vmem:[%s1781_s1 + $0x10] sm:$0xff]  ;;  %v91_v46 = vld [vmem:[%s1782_s2 + $0x40] sm:$0xff]  ;;  %v92_v47 = vld [vmem:[%s1782_s2 + $0x48] sm:$0xff]  ;;  %58 = vst.msk [vmem:[%s1784_s4 + $0x38] sm:$0xff] %vm34_vm0, %v1059_v0 }
  0x2c   :  { %1016 = vmatpush1.bf16.msra.mxu1 %v1015_v14  ;;  %986 = vmatprep.subr.bf16.mxu0 %v985_v15  ;;  %v70_v48 = vld [vmem:[%s1781_s1 + $0x18] sm:$0xff]  ;;  %v93_v49 = vld [vmem:[%s1782_s2 + $0x50] sm:$0xff]  ;;  %v71_v51 = vld [vmem:[%s1781_s1 + $0x20] sm:$0xff]  ;;  %59 = vst.msk [vmem:[%s1784_s4 + $0x40] sm:$0xff] %vm34_vm0, %v1059_v0 }
  0x2d   :  { %1018 = vmatprep.subr.bf16.mxu1 %v1017_v19  ;;  %138 = vperm.xlu0 %1030, %v84_v35   ;;  %v94_v50 = vld [vmem:[%s1782_s2 + $0x58] sm:$0xff]  ;;  %v95_v52 = vld [vmem:[%s1782_s2 + $0x60] sm:$0xff]  ;;  %v96_v53 = vld [vmem:[%s1782_s2 + $0x68] sm:$0xff]  ;;  %60 = vst.msk [vmem:[%s1784_s4 + $0x48] sm:$0xff] %vm34_vm0, %v1059_v0 }
  0x2e   :  { %148 = vperm.xlu1 %1031, %v86_v38   ;;  %v72_v54 = vld [vmem:[%s1781_s1 + $0x28] sm:$0xff]  ;;  %v97_v55 = vld [vmem:[%s1782_s2 + $0x70] sm:$0xff]  ;;  %v98_v56 = vld [vmem:[%s1782_s2 + $0x78] sm:$0xff]  ;;  %61 = vst.msk [vmem:[%s1784_s4 + $0x50] sm:$0xff] %vm34_vm0, %v1059_v0 }
  0x2f   :  { %988 = vmatpush1.bf16.msra.mxu0 %v987_v25  ;;  %v73_v57 = vld [vmem:[%s1781_s1 + $0x30] sm:$0xff]  ;;  %v74_v58 = vld [vmem:[%s1781_s1 + $0x38] sm:$0xff]  ;;  %v75_v59 = vld [vmem:[%s1781_s1 + $0x40] sm:$0xff]  ;;  %62 = vst.msk [vmem:[%s1784_s4 + $0x58] sm:$0xff] %vm34_vm0, %v1059_v0 }
  0x30   :  { %1020 = vmatpush1.bf16.msra.mxu1 %v1019_v26  ;;  %990 = vmatprep.subr.bf16.mxu0 %v989_v27  ;;  %v76_v60 = vld [vmem:[%s1781_s1 + $0x48] sm:$0xff]  ;;  %v77_v61 = vld [vmem:[%s1781_s1 + $0x50] sm:$0xff]  ;;  %v78_v62 = vld [vmem:[%s1781_s1 + $0x58] sm:$0xff]  ;;  %63 = vst.msk [vmem:[%s1784_s4 + $0x60] sm:$0xff] %vm34_vm0, %v1059_v0 }
  0x31   :  { %1022 = vmatprep.subr.bf16.mxu1 %v1021_v30  ;;  %153 = vperm.xlu0 %1030, %v87_v40   ;;  %v79_v63 = vld [vmem:[%s1781_s1 + $0x60] sm:$0xff]  ;;  %v80_v1 = vld [vmem:[%s1781_s1 + $0x68] sm:$0xff]  ;;  %v81_v2 = vld [vmem:[%s1781_s1 + $0x70] sm:$0xff]  ;;  %64 = vst.msk [vmem:[%s1784_s4 + $0x68] sm:$0xff] %vm34_vm0, %v1059_v0 }
  0x32   :  { %158 = vperm.xlu1 %1031, %v88_v41   ;;  %v82_v3 = vld [vmem:[%s1781_s1 + $0x78] sm:$0xff]  ;;  %65 = vst.msk [vmem:[%s1784_s4 + $0x70] sm:$0xff] %vm34_vm0, %v1059_v0  ;;  %66 = vst.msk [vmem:[%s1784_s4 + $0x78] sm:$0xff] %vm34_vm0, %v1059_v0 }
  0x33   :  { %992 = vmatpush1.bf16.msra.mxu0 %v991_v34 }
  0x34   :  { %1024 = vmatpush1.bf16.msra.mxu1 %v1023_v37 }
  0x35   :  { %163 = vperm.xlu0 %1030, %v89_v43  }
  0x36   :  { %276 = vmatmul.mubr.f32.vlgmr.msra.gmra.mrb[0].mxu0 %v67_v39  ;;  %168 = vperm.xlu1 %1031, %v90_v44  }
  0x37   :  { %598 = vmatmul.mubr.f32.vlgmr.msra.gmra.mrb[0].mxu1 %v67_v39  ;;  %281 = vmatprep.mubr.f32.mxu0 %v1059_v0 }
  0x38   :  { %603 = vmatprep.mubr.f32.mxu1 %v1059_v0 }
  0x39   :  { %173 = vperm.xlu0 %1030, %v91_v46  }
  0x3a   :  { %282 = vmatmul.mubr.f32.gmra.mrb[2].mxu0 %v68_v42  ;;  %178 = vperm.xlu1 %1031, %v92_v47  }
  0x3b   :  { %604 = vmatmul.mubr.f32.gmra.mrb[2].mxu1 %v68_v42  ;;  %287 = vmatprep.mubr.f32.mxu0 %v1059_v0 }
  0x3c   :  { %609 = vmatprep.mubr.f32.mxu1 %v1059_v0 }
  0x3d   :  { %183 = vperm.xlu0 %1030, %v93_v49  }
  0x3e   :  { %288 = vmatmul.mubr.f32.gmra.mrb[4].mxu0 %v69_v45  ;;  %188 = vperm.xlu1 %1031, %v94_v50  }
  0x3f   :  { %610 = vmatmul.mubr.f32.gmra.mrb[4].mxu1 %v69_v45  ;;  %293 = vmatprep.mubr.f32.mxu0 %v1059_v0 }
  0x40   :  { %615 = vmatprep.mubr.f32.mxu1 %v1059_v0 }
  0x41   :  { %193 = vperm.xlu0 %1030, %v95_v52  }
  0x42   :  { %294 = vmatmul.mubr.f32.gmra.mrb[6].mxu0 %v70_v48  ;;  %198 = vperm.xlu1 %1031, %v96_v53  }
  0x43   :  { %616 = vmatmul.mubr.f32.gmra.mrb[6].mxu1 %v70_v48  ;;  %299 = vmatprep.mubr.f32.mxu0 %v1059_v0 }
  0x44   :  { %621 = vmatprep.mubr.f32.mxu1 %v1059_v0 }
  0x45   :  { %203 = vperm.xlu0 %1030, %v97_v55  }
  0x46   :  { %300 = vmatmul.mubr.f32.gmra.mrb[8].mxu0 %v71_v51  ;;  %208 = vperm.xlu1 %1031, %v98_v56  }
  0x47   :  { %622 = vmatmul.mubr.f32.gmra.mrb[8].mxu1 %v71_v51  ;;  %305 = vmatprep.mubr.f32.mxu0 %v1059_v0 }
  0x48   :  { %627 = vmatprep.mubr.f32.mxu1 %v1059_v0 }
  0x4a   :  { %306 = vmatmul.mubr.f32.gmra.mrb[10].mxu0 %v72_v54 }
  0x4b   :  { %628 = vmatmul.mubr.f32.gmra.mrb[10].mxu1 %v72_v54  ;;  %311 = vmatprep.mubr.f32.mxu0 %v1059_v0 }
  0x4c   :  { %633 = vmatprep.mubr.f32.mxu1 %v1059_v0 }
  0x4e   :  { %312 = vmatmul.mubr.f32.gmra.mrb[12].mxu0 %v73_v57 }
  0x4f   :  { %634 = vmatmul.mubr.f32.gmra.mrb[12].mxu1 %v73_v57  ;;  %317 = vmatprep.mubr.f32.mxu0 %v1059_v0 }
  0x50   :  { %639 = vmatprep.mubr.f32.mxu1 %v1059_v0 }
  0x52   :  { %318 = vmatmul.mubr.f32.gmra.mrb[14].mxu0 %v74_v58 }
  0x53   :  { %640 = vmatmul.mubr.f32.gmra.mrb[14].mxu1 %v74_v58  ;;  %323 = vmatprep.mubr.f32.mxu0 %v1059_v0 }
  0x54   :  { %645 = vmatprep.mubr.f32.mxu1 %v1059_v0 }
  0x56   :  { %324 = vmatmul.mubr.f32.gmra.mrb[16].mxu0 %v75_v59 }
  0x57   :  { %646 = vmatmul.mubr.f32.gmra.mrb[16].mxu1 %v75_v59  ;;  %329 = vmatprep.mubr.f32.mxu0 %v1059_v0 }
  0x58   :  { %651 = vmatprep.mubr.f32.mxu1 %v1059_v0 }
  0x5a   :  { %330 = vmatmul.mubr.f32.gmra.mrb[18].mxu0 %v76_v60 }
  0x5b   :  { %652 = vmatmul.mubr.f32.gmra.mrb[18].mxu1 %v76_v60  ;;  %335 = vmatprep.mubr.f32.mxu0 %v1059_v0 }
  0x5c   :  { %657 = vmatprep.mubr.f32.mxu1 %v1059_v0 }
  0x5e   :  { %336 = vmatmul.mubr.f32.gmra.mrb[20].mxu0 %v77_v61 }
  0x5f   :  { %658 = vmatmul.mubr.f32.gmra.mrb[20].mxu1 %v77_v61  ;;  %341 = vmatprep.mubr.f32.mxu0 %v1059_v0 }
  0x60   :  { %663 = vmatprep.mubr.f32.mxu1 %v1059_v0 }
  0x62   :  { %342 = vmatmul.mubr.f32.gmra.mrb[22].mxu0 %v78_v62 }
  0x63   :  { %664 = vmatmul.mubr.f32.gmra.mrb[22].mxu1 %v78_v62  ;;  %347 = vmatprep.mubr.f32.mxu0 %v1059_v0 }
  0x64   :  { %669 = vmatprep.mubr.f32.mxu1 %v1059_v0 }
  0x66   :  { %348 = vmatmul.mubr.f32.gmra.mrb[24].mxu0 %v79_v63 }
  0x67   :  { %670 = vmatmul.mubr.f32.gmra.mrb[24].mxu1 %v79_v63  ;;  %353 = vmatprep.mubr.f32.mxu0 %v1059_v0 }
  0x68   :  { %675 = vmatprep.mubr.f32.mxu1 %v1059_v0 }
  0x6a   :  { %354 = vmatmul.mubr.f32.gmra.mrb[26].mxu0 %v80_v1 }
  0x6b   :  { %676 = vmatmul.mubr.f32.gmra.mrb[26].mxu1 %v80_v1  ;;  %359 = vmatprep.mubr.f32.mxu0 %v1059_v0 }
  0x6c   :  { %681 = vmatprep.mubr.f32.mxu1 %v1059_v0 }
  0x6e   :  { %360 = vmatmul.mubr.f32.gmra.mrb[28].mxu0 %v81_v2 }
  0x6f   :  { %682 = vmatmul.mubr.f32.gmra.mrb[28].mxu1 %v81_v2  ;;  %365 = vmatprep.mubr.f32.mxu0 %v1059_v0 }
  0x70   :  { %687 = vmatprep.mubr.f32.mxu1 %v1059_v0 }
  0x72   :  { %366 = vmatmul.mubr.f32.gmra.mrb[30].mxu0 %v82_v3 }
  0x73   :  { %688 = vmatmul.mubr.f32.gmra.mrb[30].mxu1 %v82_v3 }
  0xa8   :  { %v134_v4 = vpop.permute.xlu0 %133 }
  0xa9   :  { %v144_v24 = vpop.permute.xlu1 %143 }
  0xac   :  { %v139_v14 = vpop.permute.xlu0 %138 }
  0xad   :  { %v149_v48 = vpop.permute.xlu1 %148 }
  0xb0   :  { %v154_v2 = vpop.permute.xlu0 %153 }
 0x109   :  { %v277_v5 = vpop.f32.mrb[0].mxu0 }
 0x10a   :  { %v278_v6 = vadd.f32 %v277_v5, %v134_v4  ;;  %v599_v7 = vpop.f32.mrb[0].mxu1  ;;  %v279_v8 = vpop.f32.mrb[1].mxu0 }
 0x10b   :  { %v600_v9 = vadd.f32 %v599_v7, %v134_v4  ;;  %v280_v10 = vadd.f32 %v279_v8, %v134_v4  ;;  %v601_v11 = vpop.f32.mrb[1].mxu1 }
 0x10c   :  { %v420_v12 = vmul.f32 %v278_v6, %v278_v6  ;;  %v602_v13 = vadd.f32 %v601_v11, %v134_v4 }
 0x10d   :  { %v742_v15 = vmul.f32 %v600_v9, %v600_v9  ;;  %v421_v16 = vmul.f32 %v280_v10, %v280_v10  ;;  %v283_v17 = vpop.f32.mrb[2].mxu0  ;;  %v372_v18 = vadd.f32 %v280_v10, %v278_v6 }
 0x10e   :  { %v743_v19 = vmul.f32 %v602_v13, %v602_v13  ;;  %v284_v20 = vadd.f32 %v283_v17, %v139_v14  ;;  %v605_v21 = vpop.f32.mrb[2].mxu1  ;;  %v285_v22 = vpop.f32.mrb[3].mxu0  ;;  %v694_v23 = vadd.f32 %v602_v13, %v600_v9 }
 0x10f   :  { %v606_v25 = vadd.f32 %v605_v21, %v139_v14  ;;  %v286_v26 = vadd.f32 %v285_v22, %v139_v14  ;;  %v607_v27 = vpop.f32.mrb[3].mxu1  ;;  %373 = vadd.xlane.f32.xlu0 %v372_v18  ;;  %v452_v28 = vadd.f32 %v421_v16, %v420_v12  ;;  %v159_v18 = vpop.permute.xlu1 %158 }
 0x110   :  { %v422_v29 = vmul.f32 %v284_v20, %v284_v20  ;;  %v608_v30 = vadd.f32 %v607_v27, %v139_v14  ;;  %695 = vadd.xlane.f32.xlu1 %v694_v23  ;;  %v1226_v31 = vadd.f32 %v743_v19, %v742_v15 }
 0x111   :  { %v744_v32 = vmul.f32 %v606_v25, %v606_v25  ;;  %v423_v33 = vmul.f32 %v286_v26, %v286_v26  ;;  %v289_v34 = vpop.f32.mrb[4].mxu0  ;;  %v1228_v35 = vadd.f32 %v286_v26, %v284_v20 }
 0x112   :  { %v745_v36 = vmul.f32 %v608_v30, %v608_v30  ;;  %v697_v37 = vadd.f32 %v608_v30, %v606_v25  ;;  %v290_v38 = vadd.f32 %v289_v34, %v144_v24  ;;  %v611_v39 = vpop.f32.mrb[4].mxu1  ;;  %v291_v40 = vpop.f32.mrb[5].mxu0 }
 0x113   :  { %v612_v41 = vadd.f32 %v611_v39, %v144_v24  ;;  %v292_v42 = vadd.f32 %v291_v40, %v144_v24  ;;  %v613_v43 = vpop.f32.mrb[5].mxu1  ;;  %v455_v44 = vadd.f32 %v423_v33, %v422_v29 }
 0x114   :  { %453 = vadd.xlane.f32.xlu1 %v452_v28  ;;  %698 = vadd.xlane.f32.xlu0 %v697_v37  ;;  %v424_v45 = vmul.f32 %v290_v38, %v290_v38  ;;  %v614_v46 = vadd.f32 %v613_v43, %v144_v24  ;;  %v1230_v47 = vadd.f32 %v745_v36, %v744_v32 }
 0x115   :  { %v746_v49 = vmul.f32 %v612_v41, %v612_v41  ;;  %v425_v50 = vmul.f32 %v292_v42, %v292_v42  ;;  %v295_v51 = vpop.f32.mrb[6].mxu0  ;;  %v1232_v52 = vadd.f32 %v292_v42, %v290_v38 }
 0x116   :  { %v747_v53 = vmul.f32 %v614_v46, %v614_v46  ;;  %v296_v54 = vadd.f32 %v295_v51, %v149_v48  ;;  %v617_v55 = vpop.f32.mrb[6].mxu1  ;;  %v297_v56 = vpop.f32.mrb[7].mxu0  ;;  %v1234_v57 = vadd.f32 %v614_v46, %v612_v41 }
 0x117   :  { %v618_v58 = vadd.f32 %v617_v55, %v149_v48  ;;  %v298_v59 = vadd.f32 %v297_v56, %v149_v48  ;;  %v619_v60 = vpop.f32.mrb[7].mxu1  ;;  %v1236_v61 = vadd.f32 %v425_v50, %v424_v45 }
 0x118   :  { %v426_v62 = vmul.f32 %v296_v54, %v296_v54  ;;  %775 = vadd.xlane.f32.xlu1 %v1226_v31  ;;  %456 = vadd.xlane.f32.xlu0 %v455_v44  ;;  %v620_v63 = vadd.f32 %v619_v60, %v149_v48  ;;  %v1399_v1 = vadd.f32 %v747_v53, %v746_v49 }
 0x119   :  { %v748_v3 = vmul.f32 %v618_v58, %v618_v58  ;;  %v427_v4 = vmul.f32 %v298_v59, %v298_v59  ;;  %v301_v5 = vpop.f32.mrb[8].mxu0  ;;  %v381_v6 = vadd.f32 %v298_v59, %v296_v54 }
 0x11a   :  { %v749_v7 = vmul.f32 %v620_v63, %v620_v63  ;;  %v302_v8 = vadd.f32 %v301_v5, %v154_v2  ;;  %v623_v9 = vpop.f32.mrb[8].mxu1  ;;  %v303_v10 = vpop.f32.mrb[9].mxu0  ;;  %v1401_v11 = vadd.f32 %v620_v63, %v618_v58 }
 0x11b   :  { %v624_v12 = vadd.f32 %v623_v9, %v154_v2  ;;  %v304_v0 = vadd.f32 %v303_v10, %v154_v2  ;;  %v625_v13 = vpop.f32.mrb[9].mxu1  ;;  %v1403_v14 = vadd.f32 %v427_v4, %v426_v62 }
 0x11c   :  { %v428_v15 = vmul.f32 %v302_v8, %v302_v8  ;;  %v626_v16 = vadd.f32 %v625_v13, %v154_v2  ;;  %376 = vadd.xlane.f32.xlu1 %v1228_v35  ;;  %778 = vadd.xlane.f32.xlu0 %v1230_v47  ;;  %v1407_v17 = vadd.f32 %v749_v7, %v748_v3  ;;  %v164_v35 = vpop.permute.xlu0 %163 }
 0x11d   :  { %v750_v19 = vmul.f32 %v624_v12, %v624_v12  ;;  %v429_v20 = vmul.f32 %v304_v0, %v304_v0  ;;  %v307_v21 = vpop.f32.mrb[10].mxu0  ;;  %v1409_v22 = vadd.f32 %v304_v0, %v302_v8 }
 0x11e   :  { %v751_v23 = vmul.f32 %v626_v16, %v626_v16  ;;  %v308_v24 = vadd.f32 %v307_v21, %v159_v18  ;;  %v629_v25 = vpop.f32.mrb[10].mxu1  ;;  %v309_v26 = vpop.f32.mrb[11].mxu0  ;;  %v1411_v27 = vadd.f32 %v626_v16, %v624_v12 }
 0x11f   :  { %v630_v28 = vadd.f32 %v629_v25, %v159_v18  ;;  %v310_v29 = vadd.f32 %v309_v26, %v159_v18  ;;  %v631_v30 = vpop.f32.mrb[11].mxu1  ;;  %v1413_v31 = vadd.f32 %v429_v20, %v428_v15 }
 0x120   :  { %v430_v32 = vmul.f32 %v308_v24, %v308_v24  ;;  %v632_v33 = vadd.f32 %v631_v30, %v159_v18  ;;  %701 = vadd.xlane.f32.xlu1 %v1234_v57  ;;  %379 = vadd.xlane.f32.xlu0 %v1232_v52  ;;  %v1417_v34 = vadd.f32 %v751_v23, %v750_v19  ;;  %v169_v52 = vpop.permute.xlu1 %168  ;;  %v174_v7 = vpop.permute.xlu0 %173 }
 0x121   :  { %v752_v36 = vmul.f32 %v630_v28, %v630_v28  ;;  %v431_v37 = vmul.f32 %v310_v29, %v310_v29  ;;  %v313_v38 = vpop.f32.mrb[12].mxu0  ;;  %v1419_v39 = vadd.f32 %v310_v29, %v308_v24 }
 0x122   :  { %v753_v40 = vmul.f32 %v632_v33, %v632_v33  ;;  %v314_v41 = vadd.f32 %v313_v38, %v164_v35  ;;  %v635_v42 = vpop.f32.mrb[12].mxu1  ;;  %v315_v43 = vpop.f32.mrb[13].mxu0  ;;  %v1421_v44 = vadd.f32 %v632_v33, %v630_v28 }
 0x123   :  { %v636_v45 = vadd.f32 %v635_v42, %v164_v35  ;;  %v316_v46 = vadd.f32 %v315_v43, %v164_v35  ;;  %v637_v47 = vpop.f32.mrb[13].mxu1  ;;  %v1423_v48 = vadd.f32 %v431_v37, %v430_v32 }
 0x124   :  { %v432_v49 = vmul.f32 %v314_v41, %v314_v41  ;;  %v638_v50 = vadd.f32 %v637_v47, %v164_v35  ;;  %459 = vadd.xlane.f32.xlu1 %v1236_v61  ;;  %382 = vadd.xlane.f32.xlu0 %v381_v6  ;;  %v1426_v51 = vadd.f32 %v753_v40, %v752_v36  ;;  %v179_v25 = vpop.permute.xlu1 %178 }
 0x125   :  { %v754_v53 = vmul.f32 %v636_v45, %v636_v45  ;;  %v433_v54 = vmul.f32 %v316_v46, %v316_v46  ;;  %v319_v55 = vpop.f32.mrb[14].mxu0  ;;  %v1428_v56 = vadd.f32 %v316_v46, %v314_v41 }
 0x126   :  { %v755_v57 = vmul.f32 %v638_v50, %v638_v50  ;;  %v320_v58 = vadd.f32 %v319_v55, %v169_v52  ;;  %v641_v59 = vpop.f32.mrb[14].mxu1  ;;  %v321_v60 = vpop.f32.mrb[15].mxu0  ;;  %v1430_v62 = vadd.f32 %v638_v50, %v636_v45 }
 0x127   :  { %v642_v63 = vadd.f32 %v641_v59, %v169_v52  ;;  %v322_v2 = vadd.f32 %v321_v60, %v169_v52  ;;  %v643_v3 = vpop.f32.mrb[15].mxu1  ;;  %v1432_v4 = vadd.f32 %v433_v54, %v432_v49  ;;  %v184_v45 = vpop.permute.xlu0 %183 }
 0x128   :  { %v434_v61 = vmul.f32 %v320_v58, %v320_v58  ;;  %v644_v5 = vadd.f32 %v643_v3, %v169_v52  ;;  %781 = vadd.xlane.f32.xlu1 %v1399_v1  ;;  %704 = vadd.xlane.f32.xlu0 %v1401_v11  ;;  %v1436_v6 = vadd.f32 %v755_v57, %v754_v53  ;;  %v189_v3 = vpop.permute.xlu1 %188 }
 0x129   :  { %v756_v8 = vmul.f32 %v642_v63, %v642_v63  ;;  %v435_v9 = vmul.f32 %v322_v2, %v322_v2  ;;  %v325_v10 = vpop.f32.mrb[16].mxu0  ;;  %v1438_v12 = vadd.f32 %v322_v2, %v320_v58 }
 0x12a   :  { %v757_v0 = vmul.f32 %v644_v5, %v644_v5  ;;  %v326_v13 = vadd.f32 %v325_v10, %v174_v7  ;;  %v647_v15 = vpop.f32.mrb[16].mxu1  ;;  %v327_v16 = vpop.f32.mrb[17].mxu0  ;;  %v1440_v18 = vadd.f32 %v644_v5, %v642_v63 }
 0x12b   :  { %v648_v19 = vadd.f32 %v647_v15, %v174_v7  ;;  %v328_v20 = vadd.f32 %v327_v16, %v174_v7  ;;  %v649_v21 = vpop.f32.mrb[17].mxu1  ;;  %v1442_v1 = vadd.f32 %v435_v9, %v434_v61 }
 0x12c   :  { %v436_v11 = vmul.f32 %v326_v13, %v326_v13  ;;  %v650_v23 = vadd.f32 %v649_v21, %v174_v7  ;;  %385 = vadd.xlane.f32.xlu1 %v1409_v22  ;;  %462 = vadd.xlane.f32.xlu0 %v1403_v14  ;;  %v1446_v24 = vadd.f32 %v757_v0, %v756_v8 }
 0x12d   :  { %v758_v26 = vmul.f32 %v648_v19, %v648_v19  ;;  %v437_v28 = vmul.f32 %v328_v20, %v328_v20  ;;  %v331_v29 = vpop.f32.mrb[18].mxu0  ;;  %v1448_v30 = vadd.f32 %v328_v20, %v326_v13 }
 0x12e   :  { %v759_v32 = vmul.f32 %v650_v23, %v650_v23  ;;  %v332_v33 = vadd.f32 %v331_v29, %v179_v25  ;;  %v653_v35 = vpop.f32.mrb[18].mxu1  ;;  %v333_v36 = vpop.f32.mrb[19].mxu0  ;;  %v1450_v37 = vadd.f32 %v650_v23, %v648_v19 }
 0x12f   :  { %v654_v38 = vadd.f32 %v653_v35, %v179_v25  ;;  %v334_v40 = vadd.f32 %v333_v36, %v179_v25  ;;  %v655_v41 = vpop.f32.mrb[19].mxu1  ;;  %v1452_v22 = vadd.f32 %v437_v28, %v436_v11  ;;  %v194_v23 = vpop.permute.xlu0 %193 }
 0x130   :  { %v438_v14 = vmul.f32 %v332_v33, %v332_v33  ;;  %v656_v42 = vadd.f32 %v655_v41, %v179_v25  ;;  %707 = vadd.xlane.f32.xlu1 %v1411_v27  ;;  %784 = vadd.xlane.f32.xlu0 %v1407_v17  ;;  %v1456_v43 = vadd.f32 %v759_v32, %v758_v26 }
 0x131   :  { %v760_v46 = vmul.f32 %v654_v38, %v654_v38  ;;  %v439_v47 = vmul.f32 %v334_v40, %v334_v40  ;;  %v337_v49 = vpop.f32.mrb[20].mxu0  ;;  %v1458_v50 = vadd.f32 %v334_v40, %v332_v33 }
 0x132   :  { %v761_v52 = vmul.f32 %v656_v42, %v656_v42  ;;  %v338_v53 = vadd.f32 %v337_v49, %v184_v45  ;;  %v659_v54 = vpop.f32.mrb[20].mxu1  ;;  %v339_v55 = vpop.f32.mrb[21].mxu0  ;;  %v1460_v57 = vadd.f32 %v656_v42, %v654_v38 }
 0x133   :  { %v660_v58 = vadd.f32 %v659_v54, %v184_v45  ;;  %v340_v59 = vadd.f32 %v339_v55, %v184_v45  ;;  %v661_v60 = vpop.f32.mrb[21].mxu1  ;;  %v1462_v27 = vadd.f32 %v439_v47, %v438_v14 }
 0x134   :  { %v440_v17 = vmul.f32 %v338_v53, %v338_v53  ;;  %v662_v63 = vadd.f32 %v661_v60, %v184_v45  ;;  %465 = vadd.xlane.f32.xlu1 %v1413_v31  ;;  %388 = vadd.xlane.f32.xlu0 %v1419_v39  ;;  %v1466_v2 = vadd.f32 %v761_v52, %v760_v46  ;;  %v199_v46 = vpop.permute.xlu1 %198 }
 0x135   :  { %v762_v61 = vmul.f32 %v660_v58, %v660_v58  ;;  %v441_v5 = vmul.f32 %v340_v59, %v340_v59  ;;  %v343_v7 = vpop.f32.mrb[22].mxu0  ;;  %v1468_v8 = vadd.f32 %v340_v59, %v338_v53 }
 0x136   :  { %v763_v9 = vmul.f32 %v662_v63, %v662_v63  ;;  %v344_v10 = vadd.f32 %v343_v7, %v189_v3  ;;  %v665_v0 = vpop.f32.mrb[22].mxu1  ;;  %v345_v13 = vpop.f32.mrb[23].mxu0  ;;  %v1470_v15 = vadd.f32 %v662_v63, %v660_v58 }
 0x137   :  { %v666_v16 = vadd.f32 %v665_v0, %v189_v3  ;;  %v346_v19 = vadd.f32 %v345_v13, %v189_v3  ;;  %v667_v20 = vpop.f32.mrb[23].mxu1  ;;  %v1472_v31 = vadd.f32 %v441_v5, %v440_v17  ;;  %v204_v7 = vpop.permute.xlu0 %203 }
 0x138   :  { %v442_v39 = vmul.f32 %v344_v10, %v344_v10  ;;  %v668_v21 = vadd.f32 %v667_v20, %v189_v3  ;;  %787 = vadd.xlane.f32.xlu1 %v1417_v34  ;;  %710 = vadd.xlane.f32.xlu0 %v1421_v44  ;;  %v1476_v11 = vadd.f32 %v763_v9, %v762_v61 }
 0x139   :  { %v764_v25 = vmul.f32 %v666_v16, %v666_v16  ;;  %v443_v26 = vmul.f32 %v346_v19, %v346_v19  ;;  %v349_v28 = vpop.f32.mrb[24].mxu0  ;;  %v1478_v29 = vadd.f32 %v346_v19, %v344_v10 }
 0x13a   :  { %v765_v32 = vmul.f32 %v668_v21, %v668_v21  ;;  %v350_v33 = vadd.f32 %v349_v28, %v194_v23  ;;  %v671_v35 = vpop.f32.mrb[24].mxu1  ;;  %v351_v36 = vpop.f32.mrb[25].mxu0  ;;  %v1480_v38 = vadd.f32 %v668_v21, %v666_v16 }
 0x13b   :  { %v672_v40 = vadd.f32 %v671_v35, %v194_v23  ;;  %v352_v41 = vadd.f32 %v351_v36, %v194_v23  ;;  %v673_v14 = vpop.f32.mrb[25].mxu1  ;;  %v1482_v34 = vadd.f32 %v443_v26, %v442_v39 }
 0x13c   :  { %v444_v44 = vmul.f32 %v350_v33, %v350_v33  ;;  %v674_v42 = vadd.f32 %v673_v14, %v194_v23  ;;  %391 = vadd.xlane.f32.xlu1 %v1428_v56  ;;  %468 = vadd.xlane.f32.xlu0 %v1423_v48  ;;  %v1486_v45 = vadd.f32 %v765_v32, %v764_v25 }
 0x13d   :  { %v766_v47 = vmul.f32 %v672_v40, %v672_v40  ;;  %v445_v49 = vmul.f32 %v352_v41, %v352_v41  ;;  %v355_v52 = vpop.f32.mrb[26].mxu0  ;;  %v1488_v53 = vadd.f32 %v352_v41, %v350_v33  ;;  %v209_v33 = vpop.permute.xlu1 %208 }
 0x13e   :  { %v767_v54 = vmul.f32 %v674_v42, %v674_v42  ;;  %v356_v55 = vadd.f32 %v355_v52, %v199_v46  ;;  %v677_v58 = vpop.f32.mrb[26].mxu1  ;;  %v357_v59 = vpop.f32.mrb[27].mxu0  ;;  %v1490_v60 = vadd.f32 %v674_v42, %v672_v40 }
 0x13f   :  { %v678_v17 = vadd.f32 %v677_v58, %v199_v46  ;;  %v358_v63 = vadd.f32 %v357_v59, %v199_v46  ;;  %v679_v3 = vpop.f32.mrb[27].mxu1  ;;  %v1492_v56 = vadd.f32 %v445_v49, %v444_v44 }
 0x140   :  { %v446_v48 = vmul.f32 %v356_v55, %v356_v55  ;;  %v680_v61 = vadd.f32 %v679_v3, %v199_v46  ;;  %713 = vadd.xlane.f32.xlu1 %v1430_v62  ;;  %790 = vadd.xlane.f32.xlu0 %v1426_v51  ;;  %v1496_v5 = vadd.f32 %v767_v54, %v766_v47 }
 0x141   :  { %v768_v9 = vmul.f32 %v678_v17, %v678_v17  ;;  %v447_v10 = vmul.f32 %v358_v63, %v358_v63  ;;  %v361_v0 = vpop.f32.mrb[28].mxu0  ;;  %v411_v13 = vadd.f32 %v358_v63, %v356_v55 }
 0x142   :  { %v769_v16 = vmul.f32 %v680_v61, %v680_v61  ;;  %v362_v19 = vadd.f32 %v361_v0, %v204_v7  ;;  %v683_v20 = vpop.f32.mrb[28].mxu1  ;;  %v363_v39 = vpop.f32.mrb[29].mxu0  ;;  %v733_v21 = vadd.f32 %v680_v61, %v678_v17 }
 0x143   :  { %v684_v23 = vadd.f32 %v683_v20, %v204_v7  ;;  %v364_v25 = vadd.f32 %v363_v39, %v204_v7  ;;  %v685_v26 = vpop.f32.mrb[29].mxu1  ;;  %v491_v28 = vadd.f32 %v447_v10, %v446_v48 }
 0x144   :  { %v448_v32 = vmul.f32 %v362_v19, %v362_v19  ;;  %v686_v62 = vadd.f32 %v685_v26, %v204_v7  ;;  %471 = vadd.xlane.f32.xlu1 %v1432_v4  ;;  %394 = vadd.xlane.f32.xlu0 %v1438_v12  ;;  %v813_v51 = vadd.f32 %v769_v16, %v768_v9  ;;  %v825_v16 = vld [vmem:[%s1783_s3 + $0x18] sm:$0xff] }
 0x145   :  { %v770_v35 = vmul.f32 %v684_v23, %v684_v23  ;;  %v449_v36 = vmul.f32 %v364_v25, %v364_v25  ;;  %v367_v40 = vpop.f32.mrb[30].mxu0  ;;  %v414_v41 = vadd.f32 %v364_v25, %v362_v19 }
 0x146   :  { %v771_v14 = vmul.f32 %v686_v62, %v686_v62  ;;  %v368_v44 = vadd.f32 %v367_v40, %v209_v33  ;;  %v689_v42 = vpop.f32.mrb[30].mxu1  ;;  %v369_v46 = vpop.f32.mrb[31].mxu0  ;;  %v736_v47 = vadd.f32 %v686_v62, %v684_v23  ;;  %v891_v62 = vld [vmem:[%s1784_s4 + $0x18] sm:$0xff] }
 0x147   :  { %v690_v49 = vadd.f32 %v689_v42, %v209_v33  ;;  %v370_v52 = vadd.f32 %v369_v46, %v209_v33  ;;  %v691_v54 = vpop.f32.mrb[31].mxu1  ;;  %v494_v55 = vadd.f32 %v449_v36, %v448_v32  ;;  %v826_v32 = vld [vmem:[%s1783_s3 + $0x20] sm:$0xff]  ;;  %v827_v46 = vld [vmem:[%s1783_s3 + $0x28] sm:$0xff] }
 0x148   :  { %v450_v58 = vmul.f32 %v368_v44, %v368_v44  ;;  %v692_v59 = vadd.f32 %v691_v54, %v209_v33  ;;  %793 = vadd.xlane.f32.xlu1 %v1436_v6  ;;  %716 = vadd.xlane.f32.xlu0 %v1440_v18  ;;  %v816_v4 = vadd.f32 %v771_v14, %v770_v35  ;;  %v822_v18 = vld [vmem:[%s1783_s3] sm:$0xff] }
 0x149   :  { %v772_v12 = vmul.f32 %v690_v49, %v690_v49  ;;  %v451_v17 = vmul.f32 %v370_v52, %v370_v52  ;;  %v417_v63 = vadd.f32 %v370_v52, %v368_v44  ;;  %v892_v42 = vld [vmem:[%s1784_s4 + $0x20] sm:$0xff] }
 0x14a   :  { %v773_v3 = vmul.f32 %v692_v59, %v692_v59  ;;  %v739_v48 = vadd.f32 %v692_v59, %v690_v49 }
 0x14b   :  { %v497_v61 = vadd.f32 %v451_v17, %v450_v58  ;;  %v893_v17 = vld [vmem:[%s1784_s4 + $0x28] sm:$0xff] }
 0x14c   :  { %397 = vadd.xlane.f32.xlu1 %v1448_v30  ;;  %474 = vadd.xlane.f32.xlu0 %v1442_v1  ;;  %v819_v7 = vadd.f32 %v773_v3, %v772_v12  ;;  %v828_v12 = vld [vmem:[%s1783_s3 + $0x30] sm:$0xff] }
 0x150   :  { %719 = vadd.xlane.f32.xlu1 %v1450_v37  ;;  %796 = vadd.xlane.f32.xlu0 %v1446_v24 }
 0x154   :  { %477 = vadd.xlane.f32.xlu1 %v1452_v22  ;;  %400 = vadd.xlane.f32.xlu0 %v1458_v50 }
 0x158   :  { %799 = vadd.xlane.f32.xlu1 %v1456_v43  ;;  %722 = vadd.xlane.f32.xlu0 %v1460_v57  ;;  %v888_v43 = vld [vmem:[%s1784_s4] sm:$0xff] }
 0x15c   :  { %403 = vadd.xlane.f32.xlu1 %v1468_v8  ;;  %480 = vadd.xlane.f32.xlu0 %v1462_v27  ;;  %v823_v8 = vld [vmem:[%s1783_s3 + $0x8] sm:$0xff] }
 0x160   :  { %725 = vadd.xlane.f32.xlu1 %v1470_v15  ;;  %802 = vadd.xlane.f32.xlu0 %v1466_v2  ;;  %v889_v15 = vld [vmem:[%s1784_s4 + $0x8] sm:$0xff] }
 0x164   :  { %483 = vadd.xlane.f32.xlu1 %v1472_v31  ;;  %406 = vadd.xlane.f32.xlu0 %v1478_v29 }
 0x168   :  { %805 = vadd.xlane.f32.xlu1 %v1476_v11  ;;  %728 = vadd.xlane.f32.xlu0 %v1480_v38 }
 0x16c   :  { %409 = vadd.xlane.f32.xlu1 %v1488_v53  ;;  %486 = vadd.xlane.f32.xlu0 %v1482_v34  ;;  %v824_v53 = vld [vmem:[%s1783_s3 + $0x10] sm:$0xff] }
 0x170   :  { %731 = vadd.xlane.f32.xlu1 %v1490_v60  ;;  %808 = vadd.xlane.f32.xlu0 %v1486_v45 }
 0x174   :  { %489 = vadd.xlane.f32.xlu1 %v1492_v56  ;;  %412 = vadd.xlane.f32.xlu0 %v411_v13  ;;  %v890_v13 = vld [vmem:[%s1784_s4 + $0x10] sm:$0xff] }
 0x178   :  { %811 = vadd.xlane.f32.xlu1 %v1496_v5  ;;  %734 = vadd.xlane.f32.xlu0 %v733_v21 }
 0x17c   :  { %415 = vadd.xlane.f32.xlu1 %v414_v41  ;;  %492 = vadd.xlane.f32.xlu0 %v491_v28 }
 0x180   :  { %737 = vadd.xlane.f32.xlu1 %v736_v47  ;;  %814 = vadd.xlane.f32.xlu0 %v813_v51 }
 0x184   :  { %495 = vadd.xlane.f32.xlu1 %v494_v55  ;;  %418 = vadd.xlane.f32.xlu0 %v417_v63 }
 0x188   :  { %817 = vadd.xlane.f32.xlu1 %v816_v4  ;;  %740 = vadd.xlane.f32.xlu0 %v739_v48 }
 0x18c   :  { %498 = vadd.xlane.f32.xlu0 %v497_v61 }
 0x190   :  { %820 = vadd.xlane.f32.xlu0 %v819_v7 }
 0x19c   :  { %v374_v6 = vpop.xlane.xlu0 %373 }
 0x19d   :  { %v696_v1 = vpop.xlane.xlu1 %695 }
 0x19e   :  { %v839_v24 = vsel %vm838_vm1, %v374_v6, %v696_v1 }
 0x19f   :  { %v855_v30 = vadd.f32 %v839_v24, %v822_v18  ;;  %v894_v24 = vld [vmem:[%s1784_s4 + $0x30] sm:$0xff] }
 0x1a1   :  { %872 = vst.msk [vmem:[%s1783_s3] sm:$0xff] %vm34_vm0, %v855_v30  ;;  %v454_v37 = vpop.xlane.xlu1 %453  ;;  %v699_v22 = vpop.xlane.xlu0 %698  ;;  %v829_v30 = vld [vmem:[%s1783_s3 + $0x38] sm:$0xff] }
 0x1a5   :  { %v776_v50 = vpop.xlane.xlu1 %775  ;;  %v457_v57 = vpop.xlane.xlu0 %456 }
 0x1a6   :  { %v904_v27 = vsel %vm838_vm1, %v454_v37, %v776_v50 }
 0x1a7   :  { %v920_v2 = vadd.f32 %v904_v27, %v888_v43 }
 0x1a9   :  { %936 = vst.msk [vmem:[%s1784_s4] sm:$0xff] %vm34_vm0, %v920_v2  ;;  %v377_v31 = vpop.xlane.xlu1 %376  ;;  %v779_v11 = vpop.xlane.xlu0 %778 }
 0x1aa   :  { %v840_v29 = vsel %vm838_vm1, %v377_v31, %v699_v22  ;;  %v905_v38 = vsel %vm838_vm1, %v457_v57, %v779_v11  ;;  %v895_v31 = vld [vmem:[%s1784_s4 + $0x38] sm:$0xff] }
 0x1ab   :  { %v856_v34 = vadd.f32 %v840_v29, %v823_v8  ;;  %v921_v45 = vadd.f32 %v905_v38, %v889_v15  ;;  %v830_v15 = vld [vmem:[%s1783_s3 + $0x40] sm:$0xff] }
 0x1ad   :  { %873 = vst.msk [vmem:[%s1783_s3 + $0x8] sm:$0xff] %vm34_vm0, %v856_v34  ;;  %937 = vst.msk [vmem:[%s1784_s4 + $0x8] sm:$0xff] %vm34_vm0, %v921_v45  ;;  %v702_v60 = vpop.xlane.xlu1 %701  ;;  %v380_v56 = vpop.xlane.xlu0 %379 }
 0x1ae   :  { %v841_v5 = vsel %vm838_vm1, %v380_v56, %v702_v60 }
 0x1af   :  { %v857_v9 = vadd.f32 %v841_v5, %v824_v53  ;;  %v896_v5 = vld [vmem:[%s1784_s4 + $0x40] sm:$0xff] }
 0x1b1   :  { %874 = vst.msk [vmem:[%s1783_s3 + $0x10] sm:$0xff] %vm34_vm0, %v857_v9  ;;  %v460_v10 = vpop.xlane.xlu1 %459  ;;  %v383_v0 = vpop.xlane.xlu0 %382  ;;  %v831_v9 = vld [vmem:[%s1783_s3 + $0x48] sm:$0xff] }
 0x1b5   :  { %v782_v19 = vpop.xlane.xlu1 %781  ;;  %v705_v20 = vpop.xlane.xlu0 %704 }
 0x1b6   :  { %v906_v39 = vsel %vm838_vm1, %v460_v10, %v782_v19  ;;  %v842_v21 = vsel %vm838_vm1, %v383_v0, %v705_v20 }
 0x1b7   :  { %v922_v23 = vadd.f32 %v906_v39, %v890_v13  ;;  %v858_v25 = vadd.f32 %v842_v21, %v825_v16 }
 0x1b9   :  { %938 = vst.msk [vmem:[%s1784_s4 + $0x10] sm:$0xff] %vm34_vm0, %v922_v23  ;;  %875 = vst.msk [vmem:[%s1783_s3 + $0x18] sm:$0xff] %vm34_vm0, %v858_v25  ;;  %v386_v26 = vpop.xlane.xlu1 %385  ;;  %v463_v28 = vpop.xlane.xlu0 %462  ;;  %v832_v23 = vld [vmem:[%s1783_s3 + $0x50] sm:$0xff]  ;;  %v897_v25 = vld [vmem:[%s1784_s4 + $0x48] sm:$0xff] }
 0x1bd   :  { %v708_v51 = vpop.xlane.xlu1 %707  ;;  %v785_v33 = vpop.xlane.xlu0 %784 }
 0x1be   :  { %v843_v35 = vsel %vm838_vm1, %v386_v26, %v708_v51  ;;  %v907_v36 = vsel %vm838_vm1, %v463_v28, %v785_v33 }
 0x1bf   :  { %v859_v40 = vadd.f32 %v843_v35, %v826_v32  ;;  %v923_v41 = vadd.f32 %v907_v36, %v891_v62 }
 0x1c1   :  { %876 = vst.msk [vmem:[%s1783_s3 + $0x20] sm:$0xff] %vm34_vm0, %v859_v40  ;;  %939 = vst.msk [vmem:[%s1784_s4 + $0x18] sm:$0xff] %vm34_vm0, %v923_v41  ;;  %v466_v14 = vpop.xlane.xlu1 %465  ;;  %v389_v44 = vpop.xlane.xlu0 %388  ;;  %v898_v40 = vld [vmem:[%s1784_s4 + $0x50] sm:$0xff]  ;;  %v833_v41 = vld [vmem:[%s1783_s3 + $0x58] sm:$0xff] }
 0x1c5   :  { %v788_v47 = vpop.xlane.xlu1 %787  ;;  %v711_v49 = vpop.xlane.xlu0 %710 }
 0x1c6   :  { %v908_v52 = vsel %vm838_vm1, %v466_v14, %v788_v47  ;;  %v844_v54 = vsel %vm838_vm1, %v389_v44, %v711_v49 }
 0x1c7   :  { %v924_v55 = vadd.f32 %v908_v52, %v892_v42  ;;  %v860_v58 = vadd.f32 %v844_v54, %v827_v46 }
 0x1c9   :  { %940 = vst.msk [vmem:[%s1784_s4 + $0x20] sm:$0xff] %vm34_vm0, %v924_v55  ;;  %877 = vst.msk [vmem:[%s1783_s3 + $0x28] sm:$0xff] %vm34_vm0, %v860_v58  ;;  %v392_v59 = vpop.xlane.xlu1 %391  ;;  %v469_v4 = vpop.xlane.xlu0 %468  ;;  %v834_v55 = vld [vmem:[%s1783_s3 + $0x60] sm:$0xff]  ;;  %v899_v58 = vld [vmem:[%s1784_s4 + $0x58] sm:$0xff] }
 0x1cd   :  { %v714_v63 = vpop.xlane.xlu1 %713  ;;  %v791_v3 = vpop.xlane.xlu0 %790 }
 0x1ce   :  { %v845_v48 = vsel %vm838_vm1, %v392_v59, %v714_v63  ;;  %v909_v61 = vsel %vm838_vm1, %v469_v4, %v791_v3 }
 0x1cf   :  { %v861_v7 = vadd.f32 %v845_v48, %v828_v12  ;;  %v925_v6 = vadd.f32 %v909_v61, %v893_v17 }
 0x1d1   :  { %878 = vst.msk [vmem:[%s1783_s3 + $0x30] sm:$0xff] %vm34_vm0, %v861_v7  ;;  %941 = vst.msk [vmem:[%s1784_s4 + $0x28] sm:$0xff] %vm34_vm0, %v925_v6  ;;  %v472_v18 = vpop.xlane.xlu1 %471  ;;  %v395_v1 = vpop.xlane.xlu0 %394  ;;  %v900_v7 = vld [vmem:[%s1784_s4 + $0x60] sm:$0xff]  ;;  %v835_v6 = vld [vmem:[%s1783_s3 + $0x68] sm:$0xff] }
 0x1d5   :  { %v794_v37 = vpop.xlane.xlu1 %793  ;;  %v717_v22 = vpop.xlane.xlu0 %716 }
 0x1d6   :  { %v910_v43 = vsel %vm838_vm1, %v472_v18, %v794_v37  ;;  %v846_v50 = vsel %vm838_vm1, %v395_v1, %v717_v22 }
 0x1d7   :  { %v926_v57 = vadd.f32 %v910_v43, %v894_v24  ;;  %v862_v27 = vadd.f32 %v846_v50, %v829_v30 }
 0x1d9   :  { %942 = vst.msk [vmem:[%s1784_s4 + $0x30] sm:$0xff] %vm34_vm0, %v926_v57  ;;  %879 = vst.msk [vmem:[%s1783_s3 + $0x38] sm:$0xff] %vm34_vm0, %v862_v27  ;;  %v398_v2 = vpop.xlane.xlu1 %397  ;;  %v475_v8 = vpop.xlane.xlu0 %474  ;;  %v836_v57 = vld [vmem:[%s1783_s3 + $0x70] sm:$0xff]  ;;  %v901_v27 = vld [vmem:[%s1784_s4 + $0x68] sm:$0xff] }
 0x1dd   :  { %v720_v11 = vpop.xlane.xlu1 %719  ;;  %v797_v29 = vpop.xlane.xlu0 %796 }
 0x1de   :  { %v847_v38 = vsel %vm838_vm1, %v398_v2, %v720_v11  ;;  %v911_v34 = vsel %vm838_vm1, %v475_v8, %v797_v29 }
 0x1df   :  { %v863_v45 = vadd.f32 %v847_v38, %v830_v15  ;;  %v927_v53 = vadd.f32 %v911_v34, %v895_v31 }
 0x1e1   :  { %880 = vst.msk [vmem:[%s1783_s3 + $0x40] sm:$0xff] %vm34_vm0, %v863_v45  ;;  %943 = vst.msk [vmem:[%s1784_s4 + $0x38] sm:$0xff] %vm34_vm0, %v927_v53  ;;  %v478_v60 = vpop.xlane.xlu1 %477  ;;  %v401_v56 = vpop.xlane.xlu0 %400  ;;  %v902_v45 = vld [vmem:[%s1784_s4 + $0x70] sm:$0xff]  ;;  %v837_v53 = vld [vmem:[%s1783_s3 + $0x78] sm:$0xff] }
 0x1e5   :  { %v800_v10 = vpop.xlane.xlu1 %799  ;;  %v723_v0 = vpop.xlane.xlu0 %722 }
 0x1e6   :  { %v912_v13 = vsel %vm838_vm1, %v478_v60, %v800_v10  ;;  %v848_v16 = vsel %vm838_vm1, %v401_v56, %v723_v0 }
 0x1e7   :  { %v928_v19 = vadd.f32 %v912_v13, %v896_v5  ;;  %v864_v20 = vadd.f32 %v848_v16, %v831_v9  ;;  %v903_v16 = vld [vmem:[%s1784_s4 + $0x78] sm:$0xff] }
 0x1e9   :  { %944 = vst.msk [vmem:[%s1784_s4 + $0x40] sm:$0xff] %vm34_vm0, %v928_v19  ;;  %881 = vst.msk [vmem:[%s1783_s3 + $0x48] sm:$0xff] %vm34_vm0, %v864_v20  ;;  %v404_v39 = vpop.xlane.xlu1 %403  ;;  %v481_v21 = vpop.xlane.xlu0 %480 }
 0x1ed   :  { %v726_v26 = vpop.xlane.xlu1 %725  ;;  %v803_v28 = vpop.xlane.xlu0 %802 }
 0x1ee   :  { %v849_v32 = vsel %vm838_vm1, %v404_v39, %v726_v26  ;;  %v913_v62 = vsel %vm838_vm1, %v481_v21, %v803_v28 }
 0x1ef   :  { %v865_v51 = vadd.f32 %v849_v32, %v832_v23  ;;  %v929_v33 = vadd.f32 %v913_v62, %v897_v25 }
 0x1f1   :  { %882 = vst.msk [vmem:[%s1783_s3 + $0x50] sm:$0xff] %vm34_vm0, %v865_v51  ;;  %945 = vst.msk [vmem:[%s1784_s4 + $0x48] sm:$0xff] %vm34_vm0, %v929_v33  ;;  %v484_v35 = vpop.xlane.xlu1 %483  ;;  %v407_v36 = vpop.xlane.xlu0 %406 }
 0x1f5   :  { %v806_v14 = vpop.xlane.xlu1 %805  ;;  %v729_v44 = vpop.xlane.xlu0 %728 }
 0x1f6   :  { %v914_v42 = vsel %vm838_vm1, %v484_v35, %v806_v14  ;;  %v850_v46 = vsel %vm838_vm1, %v407_v36, %v729_v44 }
 0x1f7   :  { %v930_v47 = vadd.f32 %v914_v42, %v898_v40  ;;  %v866_v49 = vadd.f32 %v850_v46, %v833_v41 }
 0x1f9   :  { %946 = vst.msk [vmem:[%s1784_s4 + $0x50] sm:$0xff] %vm34_vm0, %v930_v47  ;;  %883 = vst.msk [vmem:[%s1783_s3 + $0x58] sm:$0xff] %vm34_vm0, %v866_v49  ;;  %v410_v52 = vpop.xlane.xlu1 %409  ;;  %v487_v54 = vpop.xlane.xlu0 %486 }
 0x1fd   :  { %v732_v59 = vpop.xlane.xlu1 %731  ;;  %v809_v4 = vpop.xlane.xlu0 %808 }
 0x1fe   :  { %v851_v12 = vsel %vm838_vm1, %v410_v52, %v732_v59  ;;  %v915_v17 = vsel %vm838_vm1, %v487_v54, %v809_v4 }
 0x1ff   :  { %v867_v63 = vadd.f32 %v851_v12, %v834_v55  ;;  %v931_v3 = vadd.f32 %v915_v17, %v899_v58 }
 0x201   :  { %884 = vst.msk [vmem:[%s1783_s3 + $0x60] sm:$0xff] %vm34_vm0, %v867_v63  ;;  %947 = vst.msk [vmem:[%s1784_s4 + $0x58] sm:$0xff] %vm34_vm0, %v931_v3  ;;  %v490_v48 = vpop.xlane.xlu1 %489  ;;  %v413_v61 = vpop.xlane.xlu0 %412 }
 0x205   :  { %v812_v18 = vpop.xlane.xlu1 %811  ;;  %v735_v1 = vpop.xlane.xlu0 %734 }
 0x206   :  { %v916_v24 = vsel %vm838_vm1, %v490_v48, %v812_v18  ;;  %v852_v30 = vsel %vm838_vm1, %v413_v61, %v735_v1 }
 0x207   :  { %v932_v37 = vadd.f32 %v916_v24, %v900_v7  ;;  %v868_v22 = vadd.f32 %v852_v30, %v835_v6 }
 0x209   :  { %948 = vst.msk [vmem:[%s1784_s4 + $0x60] sm:$0xff] %vm34_vm0, %v932_v37  ;;  %885 = vst.msk [vmem:[%s1783_s3 + $0x68] sm:$0xff] %vm34_vm0, %v868_v22  ;;  %v416_v43 = vpop.xlane.xlu1 %415  ;;  %v493_v50 = vpop.xlane.xlu0 %492 }
 0x20d   :  { %v738_v2 = vpop.xlane.xlu1 %737  ;;  %v815_v8 = vpop.xlane.xlu0 %814 }
 0x20e   :  { %v853_v15 = vsel %vm838_vm1, %v416_v43, %v738_v2  ;;  %v917_v31 = vsel %vm838_vm1, %v493_v50, %v815_v8 }
 0x20f   :  { %v869_v11 = vadd.f32 %v853_v15, %v836_v57  ;;  %v933_v29 = vadd.f32 %v917_v31, %v901_v27 }
 0x211   :  { %886 = vst.msk [vmem:[%s1783_s3 + $0x70] sm:$0xff] %vm34_vm0, %v869_v11  ;;  %949 = vst.msk [vmem:[%s1784_s4 + $0x68] sm:$0xff] %vm34_vm0, %v933_v29  ;;  %v496_v38 = vpop.xlane.xlu1 %495  ;;  %v419_v34 = vpop.xlane.xlu0 %418 }
 0x215   :  { %v818_v60 = vpop.xlane.xlu1 %817  ;;  %v741_v56 = vpop.xlane.xlu0 %740 }
 0x216   :  { %v918_v5 = vsel %vm838_vm1, %v496_v38, %v818_v60  ;;  %v854_v9 = vsel %vm838_vm1, %v419_v34, %v741_v56 }
 0x217   :  { %v934_v10 = vadd.f32 %v918_v5, %v902_v45  ;;  %v870_v0 = vadd.f32 %v854_v9, %v837_v53 }
 0x219   :  { %950 = vst.msk [vmem:[%s1784_s4 + $0x70] sm:$0xff] %vm34_vm0, %v934_v10  ;;  %887 = vst.msk [vmem:[%s1783_s3 + $0x78] sm:$0xff] %vm34_vm0, %v870_v0  ;;  %v499_v13 = vpop.xlane.xlu0 %498 }
 0x21d   :  { %v821_v19 = vpop.xlane.xlu0 %820 }
 0x21e   :  { %v919_v20 = vsel %vm838_vm1, %v499_v13, %v821_v19 }
 0x21f   :  { %v935_v39 = vadd.f32 %v919_v20, %v903_v16 }
 0x221   :  { %951 = vst.msk [vmem:[%s1784_s4 + $0x78] sm:$0xff] %vm34_vm0, %v935_v39 }
 0x222   :  { %960 = vsyncpa [#allocation3], 1 }

</bundles_post_ra>
